<compile_context>
chip_gen: v7x
topology: tpu7x:2x2x1
jax: 0.10.0
libtpu: 0.0.40
codegen_flags: <defaults>
</compile_context>

<pallas_src>
import functools

import jax
import jax.numpy as jnp
from jax import lax
from jax.experimental import pallas as pl
from jax.experimental.pallas import tpu as pltpu

_LANES = 128
_STRIP = 8  # one f32 vreg worth of sublanes


def _cdiv(a, b):
    return -(-a // b)


def _round_up(a, m):
    return _cdiv(a, m) * m


def _num_tensorcores():
    """2 only on dual-TensorCore chips (v7x); 1 on v5e/v6e and anything unknown."""
    try:
        d = jax.devices()[0]
        if d.platform == "tpu" and "v7" in str(getattr(d, "device_kind", "")).lower():
            return 2
    except Exception:
        pass
    return 1


def _hist_kernel(x_ref, out_ref, *, centers, inv_scale):
    """x_ref:  (tile_rows, 128) f32 lane-dense data tile.
    out_ref: (bins, 128) f32 lane-partial histogram, resident across grid axis 1
             (the reduction axis)."""
    bins = len(centers)

    @pl.when(pl.program_id(1) == 0)
    def _():
        out_ref[...] = jnp.zeros_like(out_ref)

    n_strips = x_ref.shape[0] // _STRIP

    def body(i, accs):
        r = pl.multiple_of(i * _STRIP, _STRIP)
        x = x_ref[pl.ds(r, _STRIP), :]  # (8, 128): one vreg, reused for all bins
        new = []
        for b, c in enumerate(centers):  # unrolled over the *real* bins only
            # K proportional to 1 - tanh(z/2)^2; the 0.5 is folded into inv_scale
            # and the 0.25 cancels in the final normalization.
            t = jnp.tanh((x - c) * inv_scale)
            new.append(accs[b] + (1.0 - t * t))
        return tuple(new)

    init = tuple(jnp.zeros((_STRIP, _LANES), jnp.float32) for _ in range(bins))
    accs = lax.fori_loop(0, n_strips, body, init)

    # Batched writeback: one (bins, 128) unmasked RMW per tile instead of
    # `bins` masked single-sublane RMWs.
    rows = [jnp.sum(a, axis=0, keepdims=True) for a in accs]  # bins x (1, 128)
    out_ref[...] += jnp.concatenate(rows, axis=0)


def smooth_differentiable_histogram(inputs, *, bins, min_val, max_val,
                                    sigma=0.1, tile_rows=1024,
                                    num_parallel=None):
    """inputs: (B, H, W) float array. Returns the normalized histogram (bins,)."""
    if num_parallel is None:
        num_parallel = _num_tensorcores()

    bin_width = (max_val - min_val) / bins
    centers = tuple(float(min_val + (i + 0.5) * bin_width) for i in range(bins))
    inv_scale = float(0.5 / (bin_width * sigma))

    x = jnp.asarray(inputs, jnp.float32).reshape(-1)
    n = x.shape[0]

    rows = max(_cdiv(n, _LANES), 1)
    tr = max(_STRIP, min(tile_rows, _round_up(_cdiv(rows, num_parallel), _STRIP)))
    n_chunks = _cdiv(rows, num_parallel * tr)
    rows_pad = num_parallel * n_chunks * tr
    n_pad = rows_pad * _LANES

    # Sentinel chosen so (sentinel - c) * inv_scale <= -40 for every bin center:
    # tanh saturates to exactly -1 in f32 (pad elements contribute exactly 0)
    # with no risk of inf/overflow in the intermediate products.
    sentinel = centers[0] - 40.0 / inv_scale
    if n_pad != n:
        # Pad only the tail (single-pass); no full-size fill+scatter round trip.
        x = jnp.pad(x, (0, n_pad - n), constant_values=sentinel)
    x3 = x.reshape(num_parallel, n_chunks * tr, _LANES)

    kernel = functools.partial(_hist_kernel, centers=centers,
                               inv_scale=inv_scale)

    partial = pl.pallas_call(
        kernel,
        out_shape=jax.ShapeDtypeStruct((num_parallel, bins, _LANES),
                                       jnp.float32),
        grid_spec=pltpu.PrefetchScalarGridSpec(
            num_scalar_prefetch=0,
            grid=(num_parallel, n_chunks),
            in_specs=[pl.BlockSpec((None, tr, _LANES),
                                   lambda p, k: (p, k, 0))],
            out_specs=pl.BlockSpec((None, bins, _LANES),
                                   lambda p, k: (p, 0, 0)),
        ),
        compiler_params=pltpu.CompilerParams(
            dimension_semantics=("parallel", "arbitrary")),
    )(x3)

    hist = partial.sum(axis=(0, 2))  # reduce cores + lanes -> (bins,)
    return hist / hist.sum()


def _reference(inputs, *, bins, min_val, max_val, sigma=0.1):
    """Pure-JAX reference mirroring the PyTorch forward exactly."""
    bin_width = (max_val - min_val) / bins
    bin_centers = jnp.linspace(min_val + 0.5 * bin_width,
                               max_val - 0.5 * bin_width, bins,
                               dtype=jnp.float32)
    x = jnp.asarray(inputs, jnp.float32).reshape(-1, 1)
    z = ((x - bin_centers[None, :]) / bin_width) / sigma
    s = 1.0 / (1.0 + jnp.exp(-z))
    k = s * (1.0 - s)
    hist = k.sum(axis=0)
    return hist / hist.sum()


if __name__ == "__main__":
    bins, min_val, max_val, sigma = 16, 0.0, 1.0, 0.1
    key = jax.random.PRNGKey(0)
    x = jax.random.uniform(key, (2, 16, 16), jnp.float32,
                           minval=min_val, maxval=max_val)

    hist = smooth_differentiable_histogram(
        x, bins=bins, min_val=min_val, max_val=max_val, sigma=sigma)
    hist = jax.block_until_ready(hist)

    ref = _reference(x, bins=bins, min_val=min_val, max_val=max_val,
                     sigma=sigma)
    assert hist.shape == (bins,)
    assert jnp.allclose(hist, ref, atol=1e-5, rtol=1e-5), (hist, ref)
    print("KERNEL_OK")
</pallas_src>

<mosaic_0001>
module attributes {stable_mosaic.version = 11 : i64} {
  func.func @_hist_kernel(%arg0: i32, %arg1: i32, %arg2: memref<1x8x128xf32, #tpu.memory_space<vmem>>, %arg3: memref<1x16x128xf32, #tpu.memory_space<vmem>>) attributes {dimension_semantics = [#tpu.dimension_semantics<parallel>, #tpu.dimension_semantics<arbitrary>], iteration_bounds = array<i64: 1, 1>, scalar_prefetch = 0 : i64, scratch_operands = 0 : i64, tpu.core_type = #tpu.core_type<tc>, window_params = [{transform_indices = @transform_0, window_bounds = array<i64: 1, 8, 128>}, {transform_indices = @transform_1, window_bounds = array<i64: 1, 16, 128>}]} {
    %c0_i32 = arith.constant 0 : i32
    %0 = arith.cmpi eq, %arg1, %c0_i32 : i32
    %1 = arith.extui %0 : i1 to i32
    %c0_i32_0 = arith.constant 0 : i32
    %2 = arith.cmpi ne, %1, %c0_i32_0 : i32
    scf.if %2 {
      %cst_88 = arith.constant 0.000000e+00 : f32
      %207 = vector.broadcast %cst_88 : f32 to vector<16x128xf32>
      %c0_89 = arith.constant 0 : index
      %c0_90 = arith.constant 0 : index
      %c0_91 = arith.constant 0 : index
      %208 = vector.load %arg3[%c0_89, %c0_90, %c0_91] : memref<1x16x128xf32, #tpu.memory_space<vmem>>, vector<1x16x128xf32>
      %209 = vector.shape_cast %208 : vector<1x16x128xf32> to vector<16x128xf32>
      %210 = vector.shape_cast %207 : vector<16x128xf32> to vector<1x16x128xf32>
      tpu.vector_store %arg3[%c0_89, %c0_90, %c0_91], %210 {strides = array<i32>} : memref<1x16x128xf32, #tpu.memory_space<vmem>>, vector<1x16x128xf32>,
    } else {
    }
    %cst = arith.constant 0.000000e+00 : f32
    %3 = vector.broadcast %cst : f32 to vector<8x128xf32>
    %cst_1 = arith.constant 0.000000e+00 : f32
    %4 = vector.broadcast %cst_1 : f32 to vector<8x128xf32>
    %cst_2 = arith.constant 0.000000e+00 : f32
    %5 = vector.broadcast %cst_2 : f32 to vector<8x128xf32>
    %cst_3 = arith.constant 0.000000e+00 : f32
    %6 = vector.broadcast %cst_3 : f32 to vector<8x128xf32>
    %cst_4 = arith.constant 0.000000e+00 : f32
    %7 = vector.broadcast %cst_4 : f32 to vector<8x128xf32>
    %cst_5 = arith.constant 0.000000e+00 : f32
    %8 = vector.broadcast %cst_5 : f32 to vector<8x128xf32>
    %cst_6 = arith.constant 0.000000e+00 : f32
    %9 = vector.broadcast %cst_6 : f32 to vector<8x128xf32>
    %cst_7 = arith.constant 0.000000e+00 : f32
    %10 = vector.broadcast %cst_7 : f32 to vector<8x128xf32>
    %cst_8 = arith.constant 0.000000e+00 : f32
    %11 = vector.broadcast %cst_8 : f32 to vector<8x128xf32>
    %cst_9 = arith.constant 0.000000e+00 : f32
    %12 = vector.broadcast %cst_9 : f32 to vector<8x128xf32>
    %cst_10 = arith.constant 0.000000e+00 : f32
    %13 = vector.broadcast %cst_10 : f32 to vector<8x128xf32>
    %cst_11 = arith.constant 0.000000e+00 : f32
    %14 = vector.broadcast %cst_11 : f32 to vector<8x128xf32>
    %cst_12 = arith.constant 0.000000e+00 : f32
    %15 = vector.broadcast %cst_12 : f32 to vector<8x128xf32>
    %cst_13 = arith.constant 0.000000e+00 : f32
    %16 = vector.broadcast %cst_13 : f32 to vector<8x128xf32>
    %cst_14 = arith.constant 0.000000e+00 : f32
    %17 = vector.broadcast %cst_14 : f32 to vector<8x128xf32>
    %cst_15 = arith.constant 0.000000e+00 : f32
    %18 = vector.broadcast %cst_15 : f32 to vector<8x128xf32>
    %c0_i32_16 = arith.constant 0 : i32
    %c8_i32 = arith.constant 8 : i32
    %19 = arith.muli %c0_i32_16, %c8_i32 : i32
    %20 = tpu.assume_multiple %19, 8 : i32
    %c0 = arith.constant 0 : index
    %21 = arith.index_cast %20 : i32 to index
    %c0_17 = arith.constant 0 : index
    %22 = vector.load %arg2[%c0, %21, %c0_17] : memref<1x8x128xf32, #tpu.memory_space<vmem>>, vector<1x8x128xf32>
    %23 = vector.shape_cast %22 : vector<1x8x128xf32> to vector<8x128xf32>
    %cst_18 = arith.constant 3.125000e-02 : f32
    %24 = vector.broadcast %cst_18 : f32 to vector<8x128xf32>
    %25 = arith.subf %23, %24 : vector<8x128xf32>
    %cst_19 = arith.constant 8.000000e+01 : f32
    %26 = vector.broadcast %cst_19 : f32 to vector<8x128xf32>
    %27 = arith.mulf %25, %26 : vector<8x128xf32>
    %28 = math.tanh %27 : vector<8x128xf32>
    %29 = arith.mulf %28, %28 : vector<8x128xf32>
    %cst_20 = arith.constant 1.000000e+00 : f32
    %30 = vector.broadcast %cst_20 : f32 to vector<8x128xf32>
    %31 = arith.subf %30, %29 : vector<8x128xf32>
    %32 = arith.addf %3, %31 : vector<8x128xf32>
    %cst_21 = arith.constant 9.375000e-02 : f32
    %33 = vector.broadcast %cst_21 : f32 to vector<8x128xf32>
    %34 = arith.subf %23, %33 : vector<8x128xf32>
    %cst_22 = arith.constant 8.000000e+01 : f32
    %35 = vector.broadcast %cst_22 : f32 to vector<8x128xf32>
    %36 = arith.mulf %34, %35 : vector<8x128xf32>
    %37 = math.tanh %36 : vector<8x128xf32>
    %38 = arith.mulf %37, %37 : vector<8x128xf32>
    %cst_23 = arith.constant 1.000000e+00 : f32
    %39 = vector.broadcast %cst_23 : f32 to vector<8x128xf32>
    %40 = arith.subf %39, %38 : vector<8x128xf32>
    %41 = arith.addf %4, %40 : vector<8x128xf32>
    %cst_24 = arith.constant 1.562500e-01 : f32
    %42 = vector.broadcast %cst_24 : f32 to vector<8x128xf32>
    %43 = arith.subf %23, %42 : vector<8x128xf32>
    %cst_25 = arith.constant 8.000000e+01 : f32
    %44 = vector.broadcast %cst_25 : f32 to vector<8x128xf32>
    %45 = arith.mulf %43, %44 : vector<8x128xf32>
    %46 = math.tanh %45 : vector<8x128xf32>
    %47 = arith.mulf %46, %46 : vector<8x128xf32>
    %cst_26 = arith.constant 1.000000e+00 : f32
    %48 = vector.broadcast %cst_26 : f32 to vector<8x128xf32>
    %49 = arith.subf %48, %47 : vector<8x128xf32>
    %50 = arith.addf %5, %49 : vector<8x128xf32>
    %cst_27 = arith.constant 2.187500e-01 : f32
    %51 = vector.broadcast %cst_27 : f32 to vector<8x128xf32>
    %52 = arith.subf %23, %51 : vector<8x128xf32>
    %cst_28 = arith.constant 8.000000e+01 : f32
    %53 = vector.broadcast %cst_28 : f32 to vector<8x128xf32>
    %54 = arith.mulf %52, %53 : vector<8x128xf32>
    %55 = math.tanh %54 : vector<8x128xf32>
    %56 = arith.mulf %55, %55 : vector<8x128xf32>
    %cst_29 = arith.constant 1.000000e+00 : f32
    %57 = vector.broadcast %cst_29 : f32 to vector<8x128xf32>
    %58 = arith.subf %57, %56 : vector<8x128xf32>
    %59 = arith.addf %6, %58 : vector<8x128xf32>
    %cst_30 = arith.constant 2.812500e-01 : f32
    %60 = vector.broadcast %cst_30 : f32 to vector<8x128xf32>
    %61 = arith.subf %23, %60 : vector<8x128xf32>
    %cst_31 = arith.constant 8.000000e+01 : f32
    %62 = vector.broadcast %cst_31 : f32 to vector<8x128xf32>
    %63 = arith.mulf %61, %62 : vector<8x128xf32>
    %64 = math.tanh %63 : vector<8x128xf32>
    %65 = arith.mulf %64, %64 : vector<8x128xf32>
    %cst_32 = arith.constant 1.000000e+00 : f32
    %66 = vector.broadcast %cst_32 : f32 to vector<8x128xf32>
    %67 = arith.subf %66, %65 : vector<8x128xf32>
    %68 = arith.addf %7, %67 : vector<8x128xf32>
    %cst_33 = arith.constant 3.437500e-01 : f32
    %69 = vector.broadcast %cst_33 : f32 to vector<8x128xf32>
    %70 = arith.subf %23, %69 : vector<8x128xf32>
    %cst_34 = arith.constant 8.000000e+01 : f32
    %71 = vector.broadcast %cst_34 : f32 to vector<8x128xf32>
    %72 = arith.mulf %70, %71 : vector<8x128xf32>
    %73 = math.tanh %72 : vector<8x128xf32>
    %74 = arith.mulf %73, %73 : vector<8x128xf32>
    %cst_35 = arith.constant 1.000000e+00 : f32
    %75 = vector.broadcast %cst_35 : f32 to vector<8x128xf32>
    %76 = arith.subf %75, %74 : vector<8x128xf32>
    %77 = arith.addf %8, %76 : vector<8x128xf32>
    %cst_36 = arith.constant 4.062500e-01 : f32
    %78 = vector.broadcast %cst_36 : f32 to vector<8x128xf32>
    %79 = arith.subf %23, %78 : vector<8x128xf32>
    %cst_37 = arith.constant 8.000000e+01 : f32
    %80 = vector.broadcast %cst_37 : f32 to vector<8x128xf32>
    %81 = arith.mulf %79, %80 : vector<8x128xf32>
    %82 = math.tanh %81 : vector<8x128xf32>
    %83 = arith.mulf %82, %82 : vector<8x128xf32>
    %cst_38 = arith.constant 1.000000e+00 : f32
    %84 = vector.broadcast %cst_38 : f32 to vector<8x128xf32>
    %85 = arith.subf %84, %83 : vector<8x128xf32>
    %86 = arith.addf %9, %85 : vector<8x128xf32>
    %cst_39 = arith.constant 4.687500e-01 : f32
    %87 = vector.broadcast %cst_39 : f32 to vector<8x128xf32>
    %88 = arith.subf %23, %87 : vector<8x128xf32>
    %cst_40 = arith.constant 8.000000e+01 : f32
    %89 = vector.broadcast %cst_40 : f32 to vector<8x128xf32>
    %90 = arith.mulf %88, %89 : vector<8x128xf32>
    %91 = math.tanh %90 : vector<8x128xf32>
    %92 = arith.mulf %91, %91 : vector<8x128xf32>
    %cst_41 = arith.constant 1.000000e+00 : f32
    %93 = vector.broadcast %cst_41 : f32 to vector<8x128xf32>
    %94 = arith.subf %93, %92 : vector<8x128xf32>
    %95 = arith.addf %10, %94 : vector<8x128xf32>
    %cst_42 = arith.constant 5.312500e-01 : f32
    %96 = vector.broadcast %cst_42 : f32 to vector<8x128xf32>
    %97 = arith.subf %23, %96 : vector<8x128xf32>
    %cst_43 = arith.constant 8.000000e+01 : f32
    %98 = vector.broadcast %cst_43 : f32 to vector<8x128xf32>
    %99 = arith.mulf %97, %98 : vector<8x128xf32>
    %100 = math.tanh %99 : vector<8x128xf32>
    %101 = arith.mulf %100, %100 : vector<8x128xf32>
    %cst_44 = arith.constant 1.000000e+00 : f32
    %102 = vector.broadcast %cst_44 : f32 to vector<8x128xf32>
    %103 = arith.subf %102, %101 : vector<8x128xf32>
    %104 = arith.addf %11, %103 : vector<8x128xf32>
    %cst_45 = arith.constant 5.937500e-01 : f32
    %105 = vector.broadcast %cst_45 : f32 to vector<8x128xf32>
    %106 = arith.subf %23, %105 : vector<8x128xf32>
    %cst_46 = arith.constant 8.000000e+01 : f32
    %107 = vector.broadcast %cst_46 : f32 to vector<8x128xf32>
    %108 = arith.mulf %106, %107 : vector<8x128xf32>
    %109 = math.tanh %108 : vector<8x128xf32>
    %110 = arith.mulf %109, %109 : vector<8x128xf32>
    %cst_47 = arith.constant 1.000000e+00 : f32
    %111 = vector.broadcast %cst_47 : f32 to vector<8x128xf32>
    %112 = arith.subf %111, %110 : vector<8x128xf32>
    %113 = arith.addf %12, %112 : vector<8x128xf32>
    %cst_48 = arith.constant 6.562500e-01 : f32
    %114 = vector.broadcast %cst_48 : f32 to vector<8x128xf32>
    %115 = arith.subf %23, %114 : vector<8x128xf32>
    %cst_49 = arith.constant 8.000000e+01 : f32
    %116 = vector.broadcast %cst_49 : f32 to vector<8x128xf32>
    %117 = arith.mulf %115, %116 : vector<8x128xf32>
    %118 = math.tanh %117 : vector<8x128xf32>
    %119 = arith.mulf %118, %118 : vector<8x128xf32>
    %cst_50 = arith.constant 1.000000e+00 : f32
    %120 = vector.broadcast %cst_50 : f32 to vector<8x128xf32>
    %121 = arith.subf %120, %119 : vector<8x128xf32>
    %122 = arith.addf %13, %121 : vector<8x128xf32>
    %cst_51 = arith.constant 7.187500e-01 : f32
    %123 = vector.broadcast %cst_51 : f32 to vector<8x128xf32>
    %124 = arith.subf %23, %123 : vector<8x128xf32>
    %cst_52 = arith.constant 8.000000e+01 : f32
    %125 = vector.broadcast %cst_52 : f32 to vector<8x128xf32>
    %126 = arith.mulf %124, %125 : vector<8x128xf32>
    %127 = math.tanh %126 : vector<8x128xf32>
    %128 = arith.mulf %127, %127 : vector<8x128xf32>
    %cst_53 = arith.constant 1.000000e+00 : f32
    %129 = vector.broadcast %cst_53 : f32 to vector<8x128xf32>
    %130 = arith.subf %129, %128 : vector<8x128xf32>
    %131 = arith.addf %14, %130 : vector<8x128xf32>
    %cst_54 = arith.constant 7.812500e-01 : f32
    %132 = vector.broadcast %cst_54 : f32 to vector<8x128xf32>
    %133 = arith.subf %23, %132 : vector<8x128xf32>
    %cst_55 = arith.constant 8.000000e+01 : f32
    %134 = vector.broadcast %cst_55 : f32 to vector<8x128xf32>
    %135 = arith.mulf %133, %134 : vector<8x128xf32>
    %136 = math.tanh %135 : vector<8x128xf32>
    %137 = arith.mulf %136, %136 : vector<8x128xf32>
    %cst_56 = arith.constant 1.000000e+00 : f32
    %138 = vector.broadcast %cst_56 : f32 to vector<8x128xf32>
    %139 = arith.subf %138, %137 : vector<8x128xf32>
    %140 = arith.addf %15, %139 : vector<8x128xf32>
    %cst_57 = arith.constant 8.437500e-01 : f32
    %141 = vector.broadcast %cst_57 : f32 to vector<8x128xf32>
    %142 = arith.subf %23, %141 : vector<8x128xf32>
    %cst_58 = arith.constant 8.000000e+01 : f32
    %143 = vector.broadcast %cst_58 : f32 to vector<8x128xf32>
    %144 = arith.mulf %142, %143 : vector<8x128xf32>
    %145 = math.tanh %144 : vector<8x128xf32>
    %146 = arith.mulf %145, %145 : vector<8x128xf32>
    %cst_59 = arith.constant 1.000000e+00 : f32
    %147 = vector.broadcast %cst_59 : f32 to vector<8x128xf32>
    %148 = arith.subf %147, %146 : vector<8x128xf32>
    %149 = arith.addf %16, %148 : vector<8x128xf32>
    %cst_60 = arith.constant 9.062500e-01 : f32
    %150 = vector.broadcast %cst_60 : f32 to vector<8x128xf32>
    %151 = arith.subf %23, %150 : vector<8x128xf32>
    %cst_61 = arith.constant 8.000000e+01 : f32
    %152 = vector.broadcast %cst_61 : f32 to vector<8x128xf32>
    %153 = arith.mulf %151, %152 : vector<8x128xf32>
    %154 = math.tanh %153 : vector<8x128xf32>
    %155 = arith.mulf %154, %154 : vector<8x128xf32>
    %cst_62 = arith.constant 1.000000e+00 : f32
    %156 = vector.broadcast %cst_62 : f32 to vector<8x128xf32>
    %157 = arith.subf %156, %155 : vector<8x128xf32>
    %158 = arith.addf %17, %157 : vector<8x128xf32>
    %cst_63 = arith.constant 9.687500e-01 : f32
    %159 = vector.broadcast %cst_63 : f32 to vector<8x128xf32>
    %160 = arith.subf %23, %159 : vector<8x128xf32>
    %cst_64 = arith.constant 8.000000e+01 : f32
    %161 = vector.broadcast %cst_64 : f32 to vector<8x128xf32>
    %162 = arith.mulf %160, %161 : vector<8x128xf32>
    %163 = math.tanh %162 : vector<8x128xf32>
    %164 = arith.mulf %163, %163 : vector<8x128xf32>
    %cst_65 = arith.constant 1.000000e+00 : f32
    %165 = vector.broadcast %cst_65 : f32 to vector<8x128xf32>
    %166 = arith.subf %165, %164 : vector<8x128xf32>
    %167 = arith.addf %18, %166 : vector<8x128xf32>
    %c1_i32 = arith.constant 1 : i32
    %cst_66 = arith.constant dense<0.000000e+00> : vector<128xf32>
    %168 = vector.multi_reduction <add>, %32, %cst_66 [0] : vector<8x128xf32> to vector<128xf32>
    %169 = vector.shape_cast %168 : vector<128xf32> to vector<1x128xf32>
    %cst_67 = arith.constant dense<0.000000e+00> : vector<128xf32>
    %170 = vector.multi_reduction <add>, %41, %cst_67 [0] : vector<8x128xf32> to vector<128xf32>
    %171 = vector.shape_cast %170 : vector<128xf32> to vector<1x128xf32>
    %cst_68 = arith.constant dense<0.000000e+00> : vector<128xf32>
    %172 = vector.multi_reduction <add>, %50, %cst_68 [0] : vector<8x128xf32> to vector<128xf32>
    %173 = vector.shape_cast %172 : vector<128xf32> to vector<1x128xf32>
    %cst_69 = arith.constant dense<0.000000e+00> : vector<128xf32>
    %174 = vector.multi_reduction <add>, %59, %cst_69 [0] : vector<8x128xf32> to vector<128xf32>
    %175 = vector.shape_cast %174 : vector<128xf32> to vector<1x128xf32>
    %cst_70 = arith.constant dense<0.000000e+00> : vector<128xf32>
    %176 = vector.multi_reduction <add>, %68, %cst_70 [0] : vector<8x128xf32> to vector<128xf32>
    %177 = vector.shape_cast %176 : vector<128xf32> to vector<1x128xf32>
    %cst_71 = arith.constant dense<0.000000e+00> : vector<128xf32>
    %178 = vector.multi_reduction <add>, %77, %cst_71 [0] : vector<8x128xf32> to vector<128xf32>
    %179 = vector.shape_cast %178 : vector<128xf32> to vector<1x128xf32>
    %cst_72 = arith.constant dense<0.000000e+00> : vector<128xf32>
    %180 = vector.multi_reduction <add>, %86, %cst_72 [0] : vector<8x128xf32> to vector<128xf32>
    %181 = vector.shape_cast %180 : vector<128xf32> to vector<1x128xf32>
    %cst_73 = arith.constant dense<0.000000e+00> : vector<128xf32>
    %182 = vector.multi_reduction <add>, %95, %cst_73 [0] : vector<8x128xf32> to vector<128xf32>
    %183 = vector.shape_cast %182 : vector<128xf32> to vector<1x128xf32>
    %cst_74 = arith.constant dense<0.000000e+00> : vector<128xf32>
    %184 = vector.multi_reduction <add>, %104, %cst_74 [0] : vector<8x128xf32> to vector<128xf32>
    %185 = vector.shape_cast %184 : vector<128xf32> to vector<1x128xf32>
    %cst_75 = arith.constant dense<0.000000e+00> : vector<128xf32>
    %186 = vector.multi_reduction <add>, %113, %cst_75 [0] : vector<8x128xf32> to vector<128xf32>
    %187 = vector.shape_cast %186 : vector<128xf32> to vector<1x128xf32>
    %cst_76 = arith.constant dense<0.000000e+00> : vector<128xf32>
    %188 = vector.multi_reduction <add>, %122, %cst_76 [0] : vector<8x128xf32> to vector<128xf32>
    %189 = vector.shape_cast %188 : vector<128xf32> to vector<1x128xf32>
    %cst_77 = arith.constant dense<0.000000e+00> : vector<128xf32>
    %190 = vector.multi_reduction <add>, %131, %cst_77 [0] : vector<8x128xf32> to vector<128xf32>
    %191 = vector.shape_cast %190 : vector<128xf32> to vector<1x128xf32>
    %cst_78 = arith.constant dense<0.000000e+00> : vector<128xf32>
    %192 = vector.multi_reduction <add>, %140, %cst_78 [0] : vector<8x128xf32> to vector<128xf32>
    %193 = vector.shape_cast %192 : vector<128xf32> to vector<1x128xf32>
    %cst_79 = arith.constant dense<0.000000e+00> : vector<128xf32>
    %194 = vector.multi_reduction <add>, %149, %cst_79 [0] : vector<8x128xf32> to vector<128xf32>
    %195 = vector.shape_cast %194 : vector<128xf32> to vector<1x128xf32>
    %cst_80 = arith.constant dense<0.000000e+00> : vector<128xf32>
    %196 = vector.multi_reduction <add>, %158, %cst_80 [0] : vector<8x128xf32> to vector<128xf32>
    %197 = vector.shape_cast %196 : vector<128xf32> to vector<1x128xf32>
    %cst_81 = arith.constant dense<0.000000e+00> : vector<128xf32>
    %198 = vector.multi_reduction <add>, %167, %cst_81 [0] : vector<8x128xf32> to vector<128xf32>
    %199 = vector.shape_cast %198 : vector<128xf32> to vector<1x128xf32>
    %c0_82 = arith.constant 0 : index
    %c0_83 = arith.constant 0 : index
    %c0_84 = arith.constant 0 : index
    %200 = vector.load %arg3[%c0_82, %c0_83, %c0_84] : memref<1x16x128xf32, #tpu.memory_space<vmem>>, vector<1x16x128xf32>
    %201 = vector.shape_cast %200 : vector<1x16x128xf32> to vector<16x128xf32>
    %202 = tpu.concatenate %169, %171, %173, %175, %177, %179, %181, %183, %185, %187, %189, %191, %193, %195, %197, %199 in 0 : vector<1x128xf32>, vector<1x128xf32>, vector<1x128xf32>, vector<1x128xf32>, vector<1x128xf32>, vector<1x128xf32>, vector<1x128xf32>, vector<1x128xf32>, vector<1x128xf32>, vector<1x128xf32>, vector<1x128xf32>, vector<1x128xf32>, vector<1x128xf32>, vector<1x128xf32>, vector<1x128xf32>, vector<1x128xf32> -> vector<16x128xf32>
    %203 = arith.addf %201, %202 : vector<16x128xf32>
    %c0_85 = arith.constant 0 : index
    %c0_86 = arith.constant 0 : index
    %c0_87 = arith.constant 0 : index
    %204 = vector.load %arg3[%c0_85, %c0_86, %c0_87] : memref<1x16x128xf32, #tpu.memory_space<vmem>>, vector<1x16x128xf32>
    %205 = vector.shape_cast %204 : vector<1x16x128xf32> to vector<16x128xf32>
    %206 = vector.shape_cast %203 : vector<16x128xf32> to vector<1x16x128xf32>
    tpu.vector_store %arg3[%c0_85, %c0_86, %c0_87], %206 {strides = array<i32>} : memref<1x16x128xf32, #tpu.memory_space<vmem>>, vector<1x16x128xf32>,
    return
  }
  func.func @transform_0(%arg0: i32, %arg1: i32) -> (i32, i32, i32) {
    %c0_i32 = arith.constant 0 : i32
    %c0_i32_0 = arith.constant 0 : i32
    return %arg0, %arg1, %c0_i32 : i32, i32, i32
  }
  func.func @transform_1(%arg0: i32, %arg1: i32) -> (i32, i32, i32) {
    %c0_i32 = arith.constant 0 : i32
    %c0_i32_0 = arith.constant 0 : i32
    %c0_i32_1 = arith.constant 0 : i32
    return %arg0, %c0_i32, %c0_i32_0 : i32, i32, i32
  }
}

</mosaic_0001>

<bundles_post_ra>
// kernel: tpu_custom_call.1
= control target key start
LH: loop header
LB: loop body
LE: loop exit
PB: predicated region body
PF: predicated region fallthrough
CT: control target
= control target key end

     0   :  { %6 = vsyncpa [#allocation3], 0  ;;  %s417_s0 = inlined_call_operand.hbm [shape: f32[1,8,128], index: 0, kind: input, shape index: {}]   ;;  %s418_s1 = inlined_call_operand.hbm [shape: f32[1,16,128], index: 1, kind: output, shape index: {}]  }
   0x1   :  { %7 = vsyncpa [#allocation4], 0  ;;  %s365_s6 = smov [#allocation2]   ;;  %s317_s10 = scalar_lea.hbm %s417_s0, 128 }
   0x2   :  { %s14_s7 = sshll.u32 %s365_s6, 4  ;;  %p318_p0 = scmp.ne.s32.totalorder %s417_s0, %s317_s10  ;;  %s15_s7 = int_to_ptr.vmem [resolvable:$true] %s14_s7 }
   0x3   :  { %p321_p1 = scmp.lt.u32.totalorder %s317_s10, %s417_s0 }
   0x5   :  { %p323_p2 = pnand %p321_p1, %p318_p0 }
   0x7   :  { %326 = shalt.err (!%p323_p2)
}
   0x8   :  { %s327_s15 = scalar_lea.vmem %s15_s7, 128  ;;  %p332_p4 = scmp.lt.s32.totalorder %s15_s7, %s15_s7 }
   0x9   :  { %p328_p3 = scmp.ne.s32.totalorder %s15_s7, %s327_s15  ;;  %p333_p5 = scmp.lt.s32.totalorder %s327_s15, %s327_s15 }
   0xb   :  { %p334_p6 = por %p333_p5, %p332_p4 }
   0xd   :  { %p335_p7 = pnand %p334_p6, %p328_p3 }
   0xf   :  { %338 = shalt.err (!%p335_p7)
}
  0x10   :  { %17 = dma.hbm_to_vmem [thread:$0]  %s417_s0, 128, %s15_s7, [#allocation3]  }
  0x11   :  { %361 = dma.done.wait [#allocation3], 128  }
  0x12   :  { %362 = vsyncadd [#allocation3], 4294967168  ;;  %v27_v0 = vld [vmem:[#allocation2] sm:$0xff]  ;;  %vm222_vm0 = vcmask 1040384   ;;  %vm224_vm1 = vcmask 1041408   ;;  %vm226_vm2 = vcmask 1042432  }
  0x13   :  { %v264_v1 = vadd.f32 -0.03125, %v27_v0  ;;  %v265_v2 = vadd.f32 -0.09375, %v27_v0  ;;  %v266_v3 = vadd.f32 -0.15625, %v27_v0  ;;  %v267_v4 = vadd.f32 -0.21875, %v27_v0  ;;  %s366_s0 = smov [#allocation5]  }
  0x14   :  { %v268_v5 = vadd.f32 -0.28125, %v27_v0  ;;  %v269_v6 = vadd.f32 -0.34375, %v27_v0  ;;  %v270_v10 = vadd.f32 -0.40625, %v27_v0  ;;  %v271_v12 = vadd.f32 -0.46875, %v27_v0  ;;  %s252_s18 = sshll.u32 %s366_s0, 4  ;;  %s253_s18 = int_to_ptr.vmem [resolvable:$true] %s252_s18 }
  0x15   :  { %v29_v7 = vmul.f32 80.0, %v264_v1  ;;  %v35_v8 = vmul.f32 80.0, %v265_v2  ;;  %v41_v9 = vmul.f32 80.0, %v266_v3  ;;  %v47_v11 = vmul.f32 80.0, %v267_v4  ;;  %s339_s19 = scalar_lea.vmem %s253_s18, 256  ;;  %p344_p9 = scmp.lt.s32.totalorder %s253_s18, %s253_s18 }
  0x16   :  { %v53_v13 = vmul.f32 80.0, %v268_v5  ;;  %v59_v14 = vmul.f32 80.0, %v269_v6  ;;  %v272_v15 = vadd.f32 -0.53125, %v27_v0  ;;  %v65_v16 = vmul.f32 80.0, %v270_v10  ;;  %p340_p8 = scmp.ne.s32.totalorder %s253_s18, %s339_s19  ;;  %p345_p10 = scmp.lt.s32.totalorder %s339_s19, %s339_s19 }
  0x17   :  { %285 = vtanh.f32 %v29_v7  ;;  %v273_v17 = vadd.f32 -0.59375, %v27_v0  ;;  %v71_v18 = vmul.f32 80.0, %v271_v12  ;;  %v274_v19 = vadd.f32 -0.65625, %v27_v0 }
  0x18   :  { %287 = vtanh.f32 %v35_v8  ;;  %v275_v20 = vadd.f32 -0.71875, %v27_v0  ;;  %v77_v21 = vmul.f32 80.0, %v272_v15  ;;  %v276_v22 = vadd.f32 -0.78125, %v27_v0  ;;  %p346_p11 = por %p345_p10, %p344_p9 }
  0x19   :  { %289 = vtanh.f32 %v41_v9  ;;  %v83_v23 = vmul.f32 80.0, %v273_v17  ;;  %v277_v24 = vadd.f32 -0.84375, %v27_v0  ;;  %v89_v25 = vmul.f32 80.0, %v274_v19 }
  0x1a   :  { %291 = vtanh.f32 %v47_v11  ;;  %v278_v26 = vadd.f32 -0.90625, %v27_v0  ;;  %v95_v27 = vmul.f32 80.0, %v275_v20  ;;  %v279_v28 = vadd.f32 -0.96875, %v27_v0  ;;  %p347_p12 = pnand %p346_p11, %p340_p8 }
  0x1b   :  { %293 = vtanh.f32 %v53_v13  ;;  %v101_v29 = vmul.f32 80.0, %v276_v22  ;;  %v107_v31 = vmul.f32 80.0, %v277_v24  ;;  %vm228_vm3 = vcmask 1043456  }
  0x1c   :  { %295 = vtanh.f32 %v59_v14  ;;  %v113_v34 = vmul.f32 80.0, %v278_v26  ;;  %v119_v37 = vmul.f32 80.0, %v279_v28  ;;  %vm230_vm4 = vcmask 1044480  }
  0x1d   :  { %297 = vtanh.f32 %v65_v16  ;;  %vm232_vm5 = vcmask 1045504   ;;  %vm234_vm6 = vcmask 1046528  }
  0x1e   :  { %299 = vtanh.f32 %v71_v18 }
  0x1f   :  { %301 = vtanh.f32 %v77_v21 }
  0x20   :  { %303 = vtanh.f32 %v83_v23 }
  0x21   :  { %v286_v30 = vpop.eup %285  ;;  %305 = vtanh.f32 %v89_v25 }
  0x22   :  { %v288_v32 = vpop.eup %287  ;;  %v31_v33 = vmul.f32 %v286_v30, %v286_v30  ;;  %307 = vtanh.f32 %v95_v27 }
  0x23   :  { %v290_v35 = vpop.eup %289  ;;  %v37_v36 = vmul.f32 %v288_v32, %v288_v32  ;;  %309 = vtanh.f32 %v101_v29 }
  0x24   :  { %v292_v38 = vpop.eup %291  ;;  %v32_v39 = vsub.f32 1.0, %v31_v33  ;;  %v43_v40 = vmul.f32 %v290_v35, %v290_v35  ;;  %311 = vtanh.f32 %v107_v31 }
  0x25   :  { %v294_v41 = vpop.eup %293  ;;  %v38_v42 = vsub.f32 1.0, %v37_v36  ;;  %v49_v43 = vmul.f32 %v292_v38, %v292_v38  ;;  %313 = vtanh.f32 %v113_v34 }
  0x26   :  { %v296_v44 = vpop.eup %295  ;;  %v44_v45 = vsub.f32 1.0, %v43_v40  ;;  %v55_v46 = vmul.f32 %v294_v41, %v294_v41  ;;  %v124_v47 = vrot.slane %v32_v39, 4  ;;  %315 = vtanh.f32 %v119_v37 }
  0x27   :  { %v298_v48 = vpop.eup %297  ;;  %v50_v49 = vsub.f32 1.0, %v49_v43  ;;  %v61_v50 = vmul.f32 %v296_v44, %v296_v44  ;;  %v130_v51 = vrot.slane %v38_v42, 4 }
  0x28   :  { %v300_v52 = vpop.eup %299  ;;  %v56_v53 = vsub.f32 1.0, %v55_v46  ;;  %v67_v54 = vmul.f32 %v298_v48, %v298_v48  ;;  %v125_v55 = vadd.f32 %v124_v47, %v32_v39  ;;  %v136_v56 = vrot.slane %v44_v45, 4 }
  0x29   :  { %v62_v57 = vsub.f32 1.0, %v61_v50  ;;  %v73_v58 = vmul.f32 %v300_v52, %v300_v52  ;;  %v131_v59 = vadd.f32 %v130_v51, %v38_v42  ;;  %v142_v60 = vrot.slane %v50_v49, 4  ;;  %v302_v61 = vpop.eup %301 }
  0x2a   :  { %v68_v62 = vsub.f32 1.0, %v67_v54  ;;  %v126_v63 = vrot.slane %v125_v55, 2  ;;  %v137_v0 = vadd.f32 %v136_v56, %v44_v45  ;;  %v148_v1 = vrot.slane %v56_v53, 4  ;;  %v304_v2 = vpop.eup %303 }
  0x2b   :  { %v74_v3 = vsub.f32 1.0, %v73_v58  ;;  %v132_v4 = vrot.slane %v131_v59, 2  ;;  %v143_v5 = vadd.f32 %v142_v60, %v50_v49  ;;  %v154_v6 = vrot.slane %v62_v57, 4  ;;  %v306_v7 = vpop.eup %305 }
  0x2c   :  { %v127_v8 = vadd.f32 %v126_v63, %v125_v55  ;;  %v138_v9 = vrot.slane %v137_v0, 2  ;;  %v149_v10 = vadd.f32 %v148_v1, %v56_v53  ;;  %v160_v11 = vrot.slane %v68_v62, 4  ;;  %v308_v12 = vpop.eup %307 }
  0x2d   :  { %v133_v13 = vadd.f32 %v132_v4, %v131_v59  ;;  %v144_v14 = vrot.slane %v143_v5, 2  ;;  %v155_v15 = vadd.f32 %v154_v6, %v62_v57  ;;  %v166_v16 = vrot.slane %v74_v3, 4  ;;  %v310_v17 = vpop.eup %309 }
  0x2e   :  { %v128_v18 = vrot.slane %v127_v8, 1  ;;  %v139_v19 = vadd.f32 %v138_v9, %v137_v0  ;;  %v150_v20 = vrot.slane %v149_v10, 2  ;;  %v161_v21 = vadd.f32 %v160_v11, %v68_v62  ;;  %v312_v22 = vpop.eup %311 }
  0x2f   :  { %v134_v23 = vrot.slane %v133_v13, 1  ;;  %v145_v24 = vadd.f32 %v144_v14, %v143_v5  ;;  %v156_v25 = vrot.slane %v155_v15, 2  ;;  %v167_v26 = vadd.f32 %v166_v16, %v74_v3  ;;  %v314_v27 = vpop.eup %313 }
  0x30   :  { %v129_v28 = vadd.f32 %v128_v18, %v127_v8  ;;  %v140_v29 = vrot.slane %v139_v19, 1  ;;  %v151_v30 = vadd.f32 %v150_v20, %v149_v10  ;;  %v162_v31 = vrot.slane %v161_v21, 2  ;;  %v316_v32 = vpop.eup %315 }
  0x31   :  { %v135_v33 = vadd.f32 %v134_v23, %v133_v13  ;;  %v146_v34 = vrot.slane %v145_v24, 1  ;;  %v157_v35 = vadd.f32 %v156_v25, %v155_v15  ;;  %v168_v36 = vrot.slane %v167_v26, 2 }
  0x32   :  { %v141_v37 = vadd.f32 %v140_v29, %v139_v19  ;;  %v152_v38 = vrot.slane %v151_v30, 1  ;;  %v163_v39 = vadd.f32 %v162_v31, %v161_v21  ;;  %v79_v40 = vmul.f32 %v302_v61, %v302_v61 }
  0x33   :  { %v147_v41 = vadd.f32 %v146_v34, %v145_v24  ;;  %v158_v42 = vrot.slane %v157_v35, 1  ;;  %v169_v43 = vadd.f32 %v168_v36, %v167_v26  ;;  %v223_v44 = vsel %vm222_vm0, %v129_v28, %v135_v33 }
  0x34   :  { %v153_v45 = vadd.f32 %v152_v38, %v151_v30  ;;  %v164_v46 = vrot.slane %v163_v39, 1  ;;  %v225_v47 = vsel %vm224_vm1, %v223_v44, %v141_v37  ;;  %v80_v48 = vsub.f32 1.0, %v79_v40 }
  0x35   :  { %v159_v49 = vadd.f32 %v158_v42, %v157_v35  ;;  %v170_v50 = vrot.slane %v169_v43, 1  ;;  %v227_v51 = vsel %vm226_vm2, %v225_v47, %v147_v41  ;;  %v85_v52 = vmul.f32 %v304_v2, %v304_v2 }
  0x36   :  { %v165_v53 = vadd.f32 %v164_v46, %v163_v39  ;;  %v229_v54 = vsel %vm228_vm3, %v227_v51, %v153_v45  ;;  %v91_v55 = vmul.f32 %v306_v7, %v306_v7  ;;  %v97_v56 = vmul.f32 %v308_v12, %v308_v12 }
  0x37   :  { %v171_v57 = vadd.f32 %v170_v50, %v169_v43  ;;  %v231_v58 = vsel %vm230_vm4, %v229_v54, %v159_v49  ;;  %v86_v59 = vsub.f32 1.0, %v85_v52  ;;  %v103_v60 = vmul.f32 %v310_v17, %v310_v17 }
  0x38   :  { %v233_v61 = vsel %vm232_vm5, %v231_v58, %v165_v53  ;;  %v92_v62 = vsub.f32 1.0, %v91_v55  ;;  %v98_v63 = vsub.f32 1.0, %v97_v56  ;;  %v109_v0 = vmul.f32 %v312_v22, %v312_v22 }
  0x39   :  { %v235_v1 = vsel %vm234_vm6, %v233_v61, %v171_v57  ;;  %v104_v3 = vsub.f32 1.0, %v103_v60  ;;  %v115_v4 = vmul.f32 %v314_v27, %v314_v27  ;;  %v121_v2 = vmul.f32 %v316_v32, %v316_v32 }
  0x3a   :  { %v110_v5 = vsub.f32 1.0, %v109_v0  ;;  %v172_v6 = vrot.slane %v80_v48, 4  ;;  %v178_v8 = vrot.slane %v86_v59, 4  ;;  %v184_v10 = vrot.slane %v92_v62, 4  ;;  %245 = vst [vmem:[#allocation5] sm:$0xff] %v235_v1 }
  0x3b   :  { %v116_v7 = vsub.f32 1.0, %v115_v4  ;;  %v122_v9 = vsub.f32 1.0, %v121_v2  ;;  %v190_v11 = vrot.slane %v98_v63, 4  ;;  %v196_v14 = vrot.slane %v104_v3, 4 }
  0x3c   :  { %v173_v12 = vadd.f32 %v172_v6, %v80_v48  ;;  %v179_v13 = vadd.f32 %v178_v8, %v86_v59  ;;  %v202_v15 = vrot.slane %v110_v5, 4  ;;  %v185_v16 = vadd.f32 %v184_v10, %v92_v62 }
  0x3d   :  { %v191_v17 = vadd.f32 %v190_v11, %v98_v63  ;;  %v208_v18 = vrot.slane %v116_v7, 4  ;;  %v214_v19 = vrot.slane %v122_v9, 4  ;;  %v197_v22 = vadd.f32 %v196_v14, %v104_v3 }
  0x3e   :  { %v174_v20 = vrot.slane %v173_v12, 2  ;;  %v180_v21 = vrot.slane %v179_v13, 2  ;;  %v203_v23 = vadd.f32 %v202_v15, %v110_v5  ;;  %v186_v24 = vrot.slane %v185_v16, 2 }
  0x3f   :  { %v192_v25 = vrot.slane %v191_v17, 2  ;;  %v209_v26 = vadd.f32 %v208_v18, %v116_v7  ;;  %v215_v27 = vadd.f32 %v214_v19, %v122_v9  ;;  %v198_v30 = vrot.slane %v197_v22, 2 }
  0x40   :  { %v175_v28 = vadd.f32 %v174_v20, %v173_v12  ;;  %v181_v29 = vadd.f32 %v180_v21, %v179_v13  ;;  %v204_v31 = vrot.slane %v203_v23, 2  ;;  %v187_v32 = vadd.f32 %v186_v24, %v185_v16 }
  0x41   :  { %v193_v33 = vadd.f32 %v192_v25, %v191_v17  ;;  %v210_v34 = vrot.slane %v209_v26, 2  ;;  %v216_v35 = vrot.slane %v215_v27, 2  ;;  %v199_v38 = vadd.f32 %v198_v30, %v197_v22 }
  0x42   :  { %v176_v36 = vrot.slane %v175_v28, 1  ;;  %v182_v37 = vrot.slane %v181_v29, 1  ;;  %v205_v39 = vadd.f32 %v204_v31, %v203_v23  ;;  %v188_v40 = vrot.slane %v187_v32, 1 }
  0x43   :  { %v194_v41 = vrot.slane %v193_v33, 1  ;;  %v211_v42 = vadd.f32 %v210_v34, %v209_v26  ;;  %v217_v43 = vadd.f32 %v216_v35, %v215_v27  ;;  %v200_v46 = vrot.slane %v199_v38, 1 }
  0x44   :  { %v177_v44 = vadd.f32 %v176_v36, %v175_v28  ;;  %v183_v45 = vadd.f32 %v182_v37, %v181_v29  ;;  %v206_v47 = vrot.slane %v205_v39, 1  ;;  %v189_v48 = vadd.f32 %v188_v40, %v187_v32 }
  0x45   :  { %v195_v49 = vadd.f32 %v194_v41, %v193_v33  ;;  %v212_v50 = vrot.slane %v211_v42, 1  ;;  %v218_v51 = vrot.slane %v217_v43, 1  ;;  %v201_v52 = vadd.f32 %v200_v46, %v199_v38 }
  0x46   :  { %v207_v53 = vadd.f32 %v206_v47, %v205_v39  ;;  %v236_v54 = vsel %vm222_vm0, %v177_v44, %v183_v45 }
  0x47   :  { %v213_v55 = vadd.f32 %v212_v50, %v211_v42  ;;  %v237_v56 = vsel %vm224_vm1, %v236_v54, %v189_v48  ;;  %v219_v57 = vadd.f32 %v218_v51, %v217_v43 }
  0x48   :  { %v238_v58 = vsel %vm226_vm2, %v237_v56, %v195_v49 }
  0x49   :  { %v239_v59 = vsel %vm228_vm3, %v238_v58, %v201_v52 }
  0x4a   :  { %v240_v60 = vsel %vm230_vm4, %v239_v59, %v207_v53 }
  0x4b   :  { %v241_v61 = vsel %vm232_vm5, %v240_v60, %v213_v55 }
  0x4c   :  { %v242_v62 = vsel %vm234_vm6, %v241_v61, %v219_v57 }
  0x4d   :  { %246 = vst [vmem:[#allocation5 + $0x8] sm:$0xff] %v242_v62 }
  0x4e   :  { %350 = shalt.err (!%p347_p12)
}
  0x4f   :  { %s351_s22 = scalar_lea.hbm %s418_s1, 256 }
  0x50   :  { %p352_p13 = scmp.ne.s32.totalorder %s418_s1, %s351_s22  ;;  %p355_p0 = scmp.lt.u32.totalorder %s351_s22, %s418_s1 }
  0x52   :  { %p357_p1 = pnand %p355_p0, %p352_p13 }
  0x54   :  { %360 = shalt.err (!%p357_p1)
}
  0x55   :  { %s367_s27 = smov 128   ;;  %s368_s28 = smov 8  }
  0x56   :  { %258 = dma.vmem_to_hbm [thread:$0]  %s253_s18, 256, %s418_s1, [#allocation4], %s367_s27, %s367_s27, %s368_s28  }
  0x57   :  { %363 = dma.done.wait [#allocation4], 256  }
  0x58   :  { %364 = vsyncadd [#allocation4], 4294967040 }
  0x59   :  { %262 = vsyncpa [#allocation3], 1 }
  0x5a   :  { %263 = vsyncpa [#allocation4], 1 }

</bundles_post_ra>
